<compile_context>
chip_gen: v6e
topology: v6e:2x2x1
jax: 0.10.0
libtpu: 0.0.40
codegen_flags: <defaults>
</compile_context>

<pallas_src>
import jax
import jax.numpy as jnp
from jax.experimental import pallas as pl
from jax.experimental.pallas import tpu as pltpu


# --------------------------------------------------------------------------
# Kernel
# --------------------------------------------------------------------------
def _fused_linear_kernel(x_ref, w_ref, b_ref, o_ref):
    # x: [TM, 50]   w: [50, 10]   b: [1, 10]   o: [TM, 10]
    # MXU runs at tiny utilization here (K=50, N=10) but is fully hidden under
    # the x-block DMA; do not pad/restructure for MXU.
    o_ref[...] = (
        jnp.dot(x_ref[...], w_ref[...], preferred_element_type=jnp.float32)
        + b_ref[...]
    ).astype(o_ref.dtype)


# --------------------------------------------------------------------------
# VMEM / tile-size accounting (padded, per review)
# --------------------------------------------------------------------------
def _round_up(n, m):
    return -(-n // m) * m


def _tiled_vmem_bytes(tm, k, n, x_itemsize):
    """Padded VMEM footprint of the tiled path (double-buffered x/out blocks,
    resident weight+bias).  Last dim pads to 128 lanes, second-minor to 8."""
    x_blk = tm * _round_up(k, 128) * x_itemsize      # streamed input block
    o_blk = tm * _round_up(n, 128) * 4               # f32 output block
    wgt = _round_up(k, 8) * _round_up(n, 128) * x_itemsize
    bias = 8 * _round_up(n, 128) * 4
    return 2 * (x_blk + o_blk) + 2 * (wgt + bias)


def _default_tm():
    """Generation-aware batch tile (rows).  Derived from padded accounting."""
    try:
        kind = jax.devices()[0].device_kind.lower()
    except Exception:  # pragma: no cover - defensive
        kind = ""
    if "v7" in kind:
        # 64 MiB VMEM: ~16 MiB padded double-buffer, keeps >=4 grid steps for
        # large B so the 2 TensorCores can split the DMA-bound work.
        return 8192
    # v5e / v6e: 128 MiB physical VMEM; ~32 MiB padded double-buffer.
    return 16384


# --------------------------------------------------------------------------
# pallas_call wrappers
# --------------------------------------------------------------------------
def _cost(B, K, N, x_itemsize):
    return pl.CostEstimate(
        flops=2 * B * K * N,
        transcendentals=0,
        bytes_accessed=x_itemsize * (B * K + K * N) + 4 * (N + B * N),
    )


def _fused_linear_small(x, w, b):
    """Gridless path for small batches: all operands resident in VMEM."""
    B, K = x.shape
    N = w.shape[1]
    return pl.pallas_call(
        _fused_linear_kernel,
        out_shape=jax.ShapeDtypeStruct((B, N), jnp.float32),
        in_specs=[
            pl.BlockSpec(memory_space=pltpu.MemorySpace.VMEM),
            pl.BlockSpec(memory_space=pltpu.MemorySpace.VMEM),
            pl.BlockSpec(memory_space=pltpu.MemorySpace.VMEM),
        ],
        out_specs=pl.BlockSpec(memory_space=pltpu.MemorySpace.VMEM),
        cost_estimate=_cost(B, K, N, x.dtype.itemsize),
    )(x, w, b)


def _fused_linear_tiled(x, w, b, *, tm):
    """Batch-tiled path: stream x in TM-row blocks, weights stay resident."""
    B, K = x.shape
    N = w.shape[1]
    # vmem limit = padded double-buffered footprint + headroom (never below a
    # sane floor so tiny test tiles don't under-budget the compiler).
    vmem_limit = max(_tiled_vmem_bytes(tm, K, N, x.dtype.itemsize) + (4 << 20),
                     16 << 20)
    return pl.pallas_call(
        _fused_linear_kernel,
        out_shape=jax.ShapeDtypeStruct((B, N), jnp.float32),
        grid=(pl.cdiv(B, tm),),
        in_specs=[
            pl.BlockSpec((tm, K), lambda i: (i, 0)),   # streamed x tile
            pl.BlockSpec((K, N), lambda i: (0, 0)),    # resident fused weight
            pl.BlockSpec((1, N), lambda i: (0, 0)),    # resident fused bias
        ],
        out_specs=pl.BlockSpec((tm, N), lambda i: (i, 0)),
        compiler_params=pltpu.CompilerParams(
            # Batch rows are independent -> let Mosaic shard grid steps across
            # both TensorCores on v7x (measured neutral on v5e/v6e).
            # TODO(synk): verify with a trace that this DMA-only kernel really
            # shards across both v7x cores; else switch to an explicit 2-wide
            # leading grid axis / core_map.
            dimension_semantics=("parallel",),
            vmem_limit_bytes=int(vmem_limit),
        ),
        cost_estimate=_cost(B, K, N, x.dtype.itemsize),
    )(x, w, b)


# --------------------------------------------------------------------------
# Public API
# --------------------------------------------------------------------------
def fuse_params(w1, b1, w2, b2):
    """Fuse the two activation-free Linears.  Call ONCE at parameter-load time
    (hoisted out of the per-call forward path)."""
    w = jnp.dot(w1, w2, preferred_element_type=jnp.float32)        # [50, 10]
    b = jnp.dot(b1, w2, preferred_element_type=jnp.float32) + b2   # [1, 10]
    return w, b


def simple_model_forward(x, w, b, *, tm=None, compute_dtype=jnp.float32):
    """x: [B, 50] -> [B, 10] f32.  `w`, `b` are the fused params from
    fuse_params().  compute_dtype=jnp.bfloat16 halves x/w read traffic while
    keeping f32 MXU accumulation and f32 output."""
    if tm is None:
        tm = _default_tm()

    if compute_dtype != x.dtype:
        x = x.astype(compute_dtype)
    if compute_dtype != w.dtype:
        w = w.astype(compute_dtype)
    # bias stays f32: it is added to the f32 accumulator.

    B = x.shape[0]
    if B <= tm:
        return _fused_linear_small(x, w, b)

    # Block second-minor dim must respect sublane packing (8 for f32, 16 for
    # sub-32-bit dtypes).
    min_rows = 8 if compute_dtype == jnp.float32 else 16
    assert tm % min_rows == 0, f"batch tile must be a multiple of {min_rows}"
    return _fused_linear_tiled(x, w, b, tm=tm)


def init_params(key):
    """Deterministic init matching torch.nn.Linear's default
    (uniform in [-1/sqrt(fan_in), 1/sqrt(fan_in)])."""
    k1, k2, k3, k4 = jax.random.split(key, 4)

    def linear(kw, kb, fan_in, fan_out):
        bound = 1.0 / jnp.sqrt(jnp.float32(fan_in))
        # Stored as [fan_in, fan_out] so the kernel does x @ W.
        wgt = jax.random.uniform(kw, (fan_in, fan_out), jnp.float32, -bound, bound)
        bias = jax.random.uniform(kb, (1, fan_out), jnp.float32, -bound, bound)
        return wgt, bias

    w1, b1 = linear(k1, k2, 50, 500)   # fc1: Linear(50, 500)
    w2, b2 = linear(k3, k4, 500, 10)   # fc2: Linear(500, 10)
    return w1, b1, w2, b2


if __name__ == "__main__":
    key = jax.random.PRNGKey(0)
    kx, kp = jax.random.split(key)
    w1, b1, w2, b2 = init_params(kp)

    # Fuse once (hoisted out of the forward path).
    w, b = fuse_params(w1, b1, w2, b2)
    w, b = jax.block_until_ready((w, b))

    # --- Small-batch (gridless) path, f32 --------------------------------
    batch = 8
    x = jax.random.normal(kx, (batch, 50), dtype=jnp.float32)
    out = jax.block_until_ready(simple_model_forward(x, w, b))
    ref = (x @ w1 + b1) @ w2 + b2
    assert out.shape == (batch, 10)
    assert jnp.allclose(out, ref, atol=1e-4, rtol=1e-4)

    # --- Batch-tiled path (tiny tile just to exercise the grid code) -----
    batch_big = 64
    x_big = jax.random.normal(kx, (batch_big, 50), dtype=jnp.float32)
    out_big = jax.block_until_ready(
        simple_model_forward(x_big, w, b, tm=16))
    ref_big = (x_big @ w1 + b1) @ w2 + b2
    assert out_big.shape == (batch_big, 10)
    assert jnp.allclose(out_big, ref_big, atol=1e-4, rtol=1e-4)

    # --- bf16 input/weight path (f32 accumulation), looser tolerance -----
    out_bf16 = jax.block_until_ready(
        simple_model_forward(x, w, b, compute_dtype=jnp.bfloat16))
    assert out_bf16.shape == (batch, 10)
    assert jnp.allclose(out_bf16, ref, atol=5e-2, rtol=5e-2)

    print("KERNEL_OK")
</pallas_src>

<mosaic_0001>
module attributes {stable_mosaic.version = 11 : i64} {
  func.func @_fused_linear_kernel(%arg0: memref<8x50xf32, #tpu.memory_space<vmem>>, %arg1: memref<50x10xf32, #tpu.memory_space<vmem>>, %arg2: memref<1x10xf32, #tpu.memory_space<vmem>>, %arg3: memref<8x10xf32, #tpu.memory_space<vmem>>) attributes {dimension_semantics = [], scalar_prefetch = 0 : i64, scratch_operands = 0 : i64, tpu.core_type = #tpu.core_type<tc>} {
    %c0 = arith.constant 0 : index
    %c0_0 = arith.constant 0 : index
    %0 = vector.load %arg0[%c0, %c0_0] : memref<8x50xf32, #tpu.memory_space<vmem>>, vector<8x50xf32>
    %c0_1 = arith.constant 0 : index
    %c0_2 = arith.constant 0 : index
    %1 = vector.load %arg1[%c0_1, %c0_2] : memref<50x10xf32, #tpu.memory_space<vmem>>, vector<50x10xf32>
    %cst = arith.constant dense<0.000000e+00> : vector<8x10xf32>
    %2 = tpu.matmul %0, %1, %cst {dimension_numbers = #tpu.dot_dimension_numbers<[1], [0], [0], [1], [0, 0, 1, 1], [], []>} : vector<8x50xf32>, vector<50x10xf32>, vector<8x10xf32> -> vector<8x10xf32>
    %c0_3 = arith.constant 0 : index
    %c0_4 = arith.constant 0 : index
    %3 = vector.load %arg2[%c0_3, %c0_4] : memref<1x10xf32, #tpu.memory_space<vmem>>, vector<1x10xf32>
    %4 = vector.broadcast %3 : vector<1x10xf32> to vector<8x10xf32>
    %5 = arith.addf %2, %4 : vector<8x10xf32>
    %c0_5 = arith.constant 0 : index
    %c0_6 = arith.constant 0 : index
    %6 = vector.load %arg3[%c0_5, %c0_6] : memref<8x10xf32, #tpu.memory_space<vmem>>, vector<8x10xf32>
    tpu.vector_store %arg3[%c0_5, %c0_6], %5 {strides = array<i32>} : memref<8x10xf32, #tpu.memory_space<vmem>>, vector<8x10xf32>,
    return
  }
}

</mosaic_0001>

<bundles_post_ra>
// kernel: tpu_custom_call.1
= control target key start
LH: loop header
LB: loop body
LE: loop exit
PB: predicated region body
PF: predicated region fallthrough
CT: control target
= control target key end

     0   :  { %vm34_vm0 = vcmask 1041408   ;;  %v177_v1 = vmov 0.0   ;;  %vm178_vm1 = vmmov 0   ;;  %s230_s0 = inlined_call_operand.vmem [shape: f32[8,50], index: 0, kind: input, shape index: {}]   ;;  %s231_s1 = inlined_call_operand.vmem [shape: f32[50,10], index: 1, kind: input, shape index: {}]   ;;  %s232_s2 = inlined_call_operand.vmem [shape: f32[1,10], index: 2, kind: input, shape index: {}]   ;;  %s233_s3 = inlined_call_operand.hbm [shape: f32[8,10], index: 3, kind: output, shape index: {}]  }
   0x1   :  { %v22_v0 = vld [vmem:[%s231_s1 + $0x30] sm:$0x3]  ;;  %135 = vmatprep.subr.mxu0 %v177_v1  ;;  %v21_v2 = vld [vmem:[%s231_s1 + $0x28] sm:$0xff]  ;;  %149 = vmatprep.mubr.msk.f32.mxu0 %vm178_vm1, %v177_v1  ;;  %v20_v3 = vld [vmem:[%s231_s1 + $0x20] sm:$0xff] }
   0x2   :  { %136 = vmatpush3.msk.msra.mxu0 %vm34_vm0, %v22_v0 }
   0x3   :  { %137 = vmatprep.subr.mxu0 %v177_v1 }
   0x4   :  { %8 = vsyncpa [#allocation3], 0  ;;  %138 = vmatpush3.msra.mxu0 %v21_v2  ;;  %v19_v4 = vld [vmem:[%s231_s1 + $0x18] sm:$0xff]  ;;  %v18_v5 = vld [vmem:[%s231_s1 + $0x10] sm:$0xff]  ;;  %vm30_vm2 = vcmask 408576   ;;  %s179_s30 = smov [#allocation2]  }
   0x5   :  { %139 = vmatprep.subr.mxu0 %v177_v1  ;;  %v17_v6 = vld [vmem:[%s231_s1 + $0x8] sm:$0xff]  ;;  %v16_v7 = vld [vmem:[%s231_s1] sm:$0xff]  ;;  %s116_s4 = sshll.u32 %s179_s30, 4  ;;  %vm108_vm3 = vcmask 80896   ;;  %s117_s4 = int_to_ptr.vmem [resolvable:$true] %s116_s4 }
   0x6   :  { %140 = vmatpush3.msra.mxu0 %v20_v3  ;;  %v15_v8 = vld [vmem:[%s230_s0] sm:$0xff]  ;;  %s155_s1 = scalar_lea.vmem %s117_s4, 128  ;;  %p160_p1 = scmp.lt.s32.totalorder %s117_s4, %s117_s4 }
   0x7   :  { %141 = vmatprep.subr.mxu0 %v177_v1  ;;  %v124_v9 = vld [vmem:[%s232_s2] ss:$0 sm:$0xff]  ;;  %p156_p0 = scmp.ne.s32.totalorder %s117_s4, %s155_s1  ;;  %p161_p2 = scmp.lt.s32.totalorder %s155_s1, %s155_s1 }
   0x8   :  { %142 = vmatpush3.msra.mxu0 %v19_v4 }
   0x9   :  { %143 = vmatprep.subr.mxu0 %v177_v1  ;;  %p162_p3 = por %p161_p2, %p160_p1 }
   0xa   :  { %144 = vmatpush3.msra.mxu0 %v18_v5 }
   0xb   :  { %145 = vmatprep.subr.mxu0 %v177_v1  ;;  %p163_p4 = pnand %p162_p3, %p156_p0 }
   0xc   :  { %146 = vmatpush3.msra.mxu0 %v17_v6 }
   0xd   :  { %147 = vmatprep.subr.mxu0 %v177_v1 }
   0xe   :  { %148 = vmatpush3.msra.mxu0 %v16_v7 }
   0xf   :  { %150 = vmatmul.mubr.msk.f32.vlgmr.msra.gmra.mxu0 %vm30_vm2, %v15_v8 }
  0xcf   :  { %v104_v10 = vpop.f32.mrf.mxu0 }
  0xd0   :  { %v105_v11 = vadd.f32 %v124_v9, %v104_v10 }
  0xd1   :  { %v151_v12 = vpop.f32.mrf.mxu0 }
  0xd2   :  { %109 = vst.msk [vmem:[#allocation2] sm:$0xff] %vm108_vm3, %v105_v11 }
  0xd3   :  { %166 = shalt.err (!%p163_p4)
}
  0xd4   :  { %119 = dma.vmem_to_hbm [thread:$0]  %s117_s4, 128, %s233_s3, [#allocation3]  }
  0xd5   :  { %175 = dma.done.wait [#allocation3], 128  }
  0xd6   :  { %176 = vsyncadd [#allocation3], 4294967168 }
  0xd7   :  { %123 = vsyncpa [#allocation3], 1 }

</bundles_post_ra>
